<compile_context>
chip_gen: v6e
topology: v6e:2x2x1
jax: 0.10.0
libtpu: 0.0.40
codegen_flags: <defaults>
</compile_context>

<pallas_src>
import numpy as np
import jax
import jax.numpy as jnp
from jax.experimental import pallas as pl
from jax.experimental.pallas import tpu as pltpu


def _round_up(x, m):
    return (x + m - 1) // m * m


def _make_kernel(precision):
    def kernel(basis_ref, frames_ref, out_ref):
        # basis_ref : (2*F_pad, n_fft)  window-folded [cos ; -sin] DFT basis
        # frames_ref: (n_fft, TF)       one frames tile, time-frames on lanes
        # out_ref   : (n_freq, TF)      power spectrogram |X|^2, freq on sublanes
        f_pad = basis_ref.shape[0] // 2
        y = jnp.dot(basis_ref[...], frames_ref[...],
                    preferred_element_type=jnp.float32,
                    precision=precision)                 # (2*F_pad, TF), f32 acc
        real = y[:f_pad]                                 # sublane-aligned split
        imag = y[f_pad:]
        power = real * real + imag * imag                # power = 2.0
        out_ref[...] = power[: out_ref.shape[0]]         # drop padded freq rows
    return kernel


def make_spectrogram(n_fft=16, win_length=None, hop_length=None, use_bf16=True):
    """Returns forward: waveform (B, T) float32 -> (B, n_fft//2+1, n_frames)."""
    win_length = n_fft if win_length is None else win_length
    hop_length = win_length // 2 if hop_length is None else hop_length
    n_freq = n_fft // 2 + 1
    f_pad = _round_up(n_freq, 8)                         # sublane-aligned split point
    compute_dtype = jnp.bfloat16 if use_bf16 else jnp.float32

    # torch.hann_window(win_length) is periodic: 0.5 - 0.5*cos(2*pi*n/N),
    # centered inside n_fft like torch.stft when win_length < n_fft.
    n = np.arange(win_length, dtype=np.float64)
    win = 0.5 - 0.5 * np.cos(2.0 * np.pi * n / win_length)
    full_window = np.zeros((n_fft,), dtype=np.float64)
    start = (n_fft - win_length) // 2
    full_window[start:start + win_length] = win

    # Fused, window-folded DFT basis (onesided bins):
    #   X[k] = sum_n x[n]*w[n]*exp(-2*pi*i*n*k/N)
    # rows [0, f_pad) -> w*cos, rows [f_pad, 2*f_pad) -> -w*sin (pads are zero).
    nn = np.arange(n_fft, dtype=np.float64)[:, None]
    kk = np.arange(n_freq, dtype=np.float64)[None, :]
    ang = 2.0 * np.pi * nn * kk / n_fft
    basis = np.zeros((n_fft, 2 * f_pad), dtype=np.float64)
    basis[:, :n_freq] = np.cos(ang)
    basis[:, f_pad:f_pad + n_freq] = -np.sin(ang)
    basis *= full_window[:, None]                        # fold window into basis
    basis_t = jnp.asarray(basis.T, dtype=compute_dtype)  # (2*f_pad, n_fft)

    precision = None if use_bf16 else jax.lax.Precision.HIGHEST
    kernel = _make_kernel(precision)

    def forward(waveform):
        waveform = jnp.asarray(waveform, dtype=jnp.float32)
        assert waveform.ndim == 2, "expected (batch, time)"
        B, T = waveform.shape
        pad = n_fft // 2
        assert T > pad, "reflect padding requires time > n_fft // 2"

        # center=True, pad_mode='reflect'
        padded = jnp.pad(waveform, ((0, 0), (pad, pad)), mode="reflect")
        L = T + 2 * pad
        n_frames = 1 + (L - n_fft) // hop_length

        # Frame-tile size: lane-dense (multiple of 128) when possible, capped at
        # 256 frames so frames + output double buffers stay small (v7x VMEM).
        if n_frames >= 256:
            tf = 256
        elif n_frames >= 128:
            tf = 128
        else:
            tf = n_frames
        n_tiles = pl.cdiv(n_frames, tf)
        n_frames_pad = n_tiles * tf

        # Frames laid out (n_fft, frames): time-frames become the MXU N / lane dim,
        # so the kernel emits (freq, time) directly with no transpose afterwards.
        # TODO(synk): with 50% overlap this gather materializes ~2x the waveform in
        # HBM; an in-kernel strided-DMA framing path would halve input traffic.
        idx = (np.arange(n_fft, dtype=np.int32)[:, None]
               + np.arange(n_frames_pad, dtype=np.int32)[None, :] * hop_length)
        idx = np.minimum(idx, L - 1)          # clamp pad-column reads (discarded)
        frames = padded.astype(compute_dtype)[:, idx]     # (B, n_fft, n_frames_pad)

        out = pl.pallas_call(
            kernel,
            out_shape=jax.ShapeDtypeStruct((B, n_freq, n_frames_pad), jnp.float32),
            grid_spec=pltpu.PrefetchScalarGridSpec(
                num_scalar_prefetch=0,
                grid=(B, n_tiles),
                in_specs=[
                    # fused basis: resident across the whole grid
                    pl.BlockSpec((2 * f_pad, n_fft), lambda b, t: (0, 0)),
                    # one frames tile of one batch element
                    pl.BlockSpec((pl.Squeezed(), n_fft, tf),
                                 lambda b, t: (b, 0, t)),
                ],
                out_specs=pl.BlockSpec((pl.Squeezed(), n_freq, tf),
                                       lambda b, t: (b, 0, t)),
            ),
            compiler_params=pltpu.CompilerParams(
                dimension_semantics=("parallel", "parallel")),
        )(basis_t, frames)

        if n_frames_pad != n_frames:
            out = out[:, :, :n_frames]
        return out                                        # (B, freq, time)

    return forward


def _reference_np(wave, n_fft, hop_length):
    """float64 NumPy ground truth matching torchaudio semantics."""
    x = np.asarray(wave, dtype=np.float64)
    pad = n_fft // 2
    xp = np.pad(x, ((0, 0), (pad, pad)), mode="reflect")
    n_frames = 1 + (xp.shape[1] - n_fft) // hop_length
    idx = (np.arange(n_frames)[:, None] * hop_length
           + np.arange(n_fft)[None, :])
    window = 0.5 - 0.5 * np.cos(2.0 * np.pi * np.arange(n_fft) / n_fft)
    frames = xp[:, idx] * window                          # (B, n_frames, n_fft)
    spec = np.fft.rfft(frames, n=n_fft, axis=-1)          # (B, n_frames, n_freq)
    power = np.abs(spec) ** 2
    return np.transpose(power, (0, 2, 1))                 # (B, freq, time)


if __name__ == "__main__":
    # Small shapes consistent with the module: n_fft=16 -> 9 freq bins,
    # hop = win_length // 2 = 8, batch=2, time=64 -> 9 frames.
    n_fft = 16
    hop = n_fft // 2
    B, T = 2, 64

    key = jax.random.PRNGKey(0)
    waveform = jax.random.normal(key, (B, T), dtype=jnp.float32)

    ref = _reference_np(np.asarray(waveform), n_fft, hop)
    expected_shape = (B, n_fft // 2 + 1, 1 + T // hop)

    # f32 path (precision=HIGHEST): tight check against float64 reference.
    spectro_f32 = make_spectrogram(n_fft=n_fft, use_bf16=False)
    out_f32 = jax.block_until_ready(spectro_f32(waveform))
    assert out_f32.shape == expected_shape, (out_f32.shape, expected_shape)
    np.testing.assert_allclose(np.asarray(out_f32), ref, rtol=1e-4, atol=1e-4)

    # Default bf16 MXU path: tolerance appropriate for bf16 inputs / f32 accumulate.
    spectro_bf16 = make_spectrogram(n_fft=n_fft, use_bf16=True)
    out_bf16 = jax.block_until_ready(spectro_bf16(waveform))
    assert out_bf16.shape == expected_shape, (out_bf16.shape, expected_shape)
    scale = float(np.max(ref))
    np.testing.assert_allclose(np.asarray(out_bf16), ref,
                               rtol=1e-1, atol=1e-2 * scale + 1e-3)

    print("KERNEL_OK")
</pallas_src>

<mosaic_0001>
module attributes {stable_mosaic.version = 11 : i64} {
  func.func @kernel(%arg0: i32, %arg1: i32, %arg2: memref<32x16xf32, #tpu.memory_space<vmem>>, %arg3: memref<1x16x9xf32, #tpu.memory_space<vmem>>, %arg4: memref<1x9x9xf32, #tpu.memory_space<vmem>>) attributes {dimension_semantics = [#tpu.dimension_semantics<parallel>, #tpu.dimension_semantics<parallel>], iteration_bounds = array<i64: 2, 1>, scalar_prefetch = 0 : i64, scratch_operands = 0 : i64, tpu.core_type = #tpu.core_type<tc>, window_params = [{pipeline_mode = #tpu.pipeline_mode<synchronous>, transform_indices = @transform_0, window_bounds = array<i64: 32, 16>}, {transform_indices = @transform_1, window_bounds = array<i64: 1, 16, 9>}, {transform_indices = @transform_2, window_bounds = array<i64: 1, 9, 9>}]} {
    %c0 = arith.constant 0 : index
    %c0_0 = arith.constant 0 : index
    %0 = vector.load %arg2[%c0, %c0_0] : memref<32x16xf32, #tpu.memory_space<vmem>>, vector<32x16xf32>
    %c0_1 = arith.constant 0 : index
    %c0_2 = arith.constant 0 : index
    %c0_3 = arith.constant 0 : index
    %1 = vector.load %arg3[%c0_1, %c0_2, %c0_3] : memref<1x16x9xf32, #tpu.memory_space<vmem>>, vector<1x16x9xf32>
    %2 = vector.shape_cast %1 : vector<1x16x9xf32> to vector<16x9xf32>
    %cst = arith.constant dense<0.000000e+00> : vector<32x9xf32>
    %3 = tpu.matmul %0, %2, %cst {dimension_numbers = #tpu.dot_dimension_numbers<[1], [0], [0], [1], [0, 0, 1, 1], [], []>, precision = #tpu.contract_precision<fp32>} : vector<32x16xf32>, vector<16x9xf32>, vector<32x9xf32> -> vector<32x9xf32>
    %4 = vector.extract_strided_slice %3 {offsets = [0, 0], sizes = [16, 9], strides = [1, 1]} : vector<32x9xf32> to vector<16x9xf32>
    %5 = vector.extract_strided_slice %3 {offsets = [16, 0], sizes = [16, 9], strides = [1, 1]} : vector<32x9xf32> to vector<16x9xf32>
    %6 = arith.mulf %4, %4 : vector<16x9xf32>
    %7 = arith.mulf %5, %5 : vector<16x9xf32>
    %8 = arith.addf %6, %7 : vector<16x9xf32>
    %9 = vector.extract_strided_slice %8 {offsets = [0, 0], sizes = [9, 9], strides = [1, 1]} : vector<16x9xf32> to vector<9x9xf32>
    %c0_4 = arith.constant 0 : index
    %c0_5 = arith.constant 0 : index
    %c0_6 = arith.constant 0 : index
    %10 = vector.load %arg4[%c0_4, %c0_5, %c0_6] : memref<1x9x9xf32, #tpu.memory_space<vmem>>, vector<1x9x9xf32>
    %11 = vector.shape_cast %10 : vector<1x9x9xf32> to vector<9x9xf32>
    %12 = vector.shape_cast %9 : vector<9x9xf32> to vector<1x9x9xf32>
    tpu.vector_store %arg4[%c0_4, %c0_5, %c0_6], %12 {strides = array<i32>} : memref<1x9x9xf32, #tpu.memory_space<vmem>>, vector<1x9x9xf32>,
    return
  }
  func.func @transform_0(%arg0: i32, %arg1: i32) -> (i32, i32) {
    %c0_i32 = arith.constant 0 : i32
    %c0_i32_0 = arith.constant 0 : i32
    %c0_i32_1 = arith.constant 0 : i32
    return %c0_i32, %c0_i32_0 : i32, i32
  }
  func.func @transform_1(%arg0: i32, %arg1: i32) -> (i32, i32, i32) {
    %c0_i32 = arith.constant 0 : i32
    %c0_i32_0 = arith.constant 0 : i32
    return %arg0, %c0_i32, %arg1 : i32, i32, i32
  }
  func.func @transform_2(%arg0: i32, %arg1: i32) -> (i32, i32, i32) {
    %c0_i32 = arith.constant 0 : i32
    %c0_i32_0 = arith.constant 0 : i32
    return %arg0, %c0_i32, %arg1 : i32, i32, i32
  }
}

</mosaic_0001>

<bundles_post_ra>
// kernel: tpu_custom_call.1
= control target key start
LH: loop header
LB: loop body
LE: loop exit
PB: predicated region body
PF: predicated region fallthrough
CT: control target
= control target key end

     0   :  { %s1047_s9 = smov 0   ;;  %s1049_s10 = smov 0   ;;  %s1138_s0 = inlined_call_operand.vmem [shape: f32[32,16], index: 0, kind: input, shape index: {}]   ;;  %s1139_s1 = inlined_call_operand.vmem [shape: f32[2,16,9], index: 1, kind: input, shape index: {}]   ;;  %s1140_s2 = inlined_call_operand.vmem [shape: f32[2,9,9], index: 2, kind: output, shape index: {}]  }
   0x1   :  { %s1051_s11 = smov 0  }
   0x2 LB: > { %s24_s12 = sadd.s32 1, %s1026_s10  ;;  %p879_p0 = scmp.ge.s32.totalorder %s1030_s11, 1  ;;  %s1030_s11 = sphi %s1051_s11, %s12_s11   ;;  %s1026_s10 = sphi %s1049_s10, %s1142_s10   ;;  %s1022_s9 = sphi %s1047_s9, %s1141_s9  }
   0x3   : > { %p26_p1 = scmp.ge.s32.totalorder %s24_s12, 2  ;;  %p131_p2 = scmp.lt.s32.totalorder %s1030_s11, 3 }
   0x5   : > { %s1144_s12 = smov (%p26_p1, %s24_s12), 0  ;;  %p132_p3 = pnand %p879_p0, %p131_p2 }
   0x6   : > { %p159_p4 = scmp.lt.s32.totalorder (!%p132_p3), %s1022_s9, 1 }
   0x7   : > { %135 = sbr.rel (%p132_p3) target bundleno = 254 (0xfe), region = 28 }
   0xc   : > { %v175_v0 = vld [vmem:[%s1138_s0] sm:$0xff]  ;;  %vm181_vm0 = vcmask 130048   ;;  %v176_v1 = vld [vmem:[%s1138_s0 + $0x8] sm:$0xff]  ;;  %v177_v2 = vld [vmem:[%s1138_s0 + $0x10] sm:$0xff]  ;;  %s1146_s9 = smov (!%p159_p4, %s1022_s9), 1  ;;  %vm790_vm1 = vcmask 65536  }
   0xd   : > { %v183_v3 = vsel %vm181_vm0, %v175_v0, 0  ;;  %v186_v4 = vsel %vm181_vm0, %v176_v1, 0  ;;  %v189_v5 = vsel %vm181_vm0, %v177_v2, 0  ;;  %v178_v6 = vld [vmem:[%s1138_s0 + $0x18] sm:$0xff]  ;;  %s886_s21 = sshll.u32 %s1146_s9, 4  ;;  %vm788_vm2 = vcmask 72704  }
   0xe   : > { %v1079_v7 = vand.u32 4294901760, %v183_v3  ;;  %v1081_v8 = vand.u32 4294901760, %v186_v4  ;;  %v1083_v9 = vand.u32 4294901760, %v189_v5  ;;  %v192_v10 = vsel %vm181_vm0, %v178_v6, 0  ;;  %s166_s24 = scalar_lea.vmem %s1139_s1, %s886_s21  ;;  %s174_s27 = scalar_lea.vmem %s1140_s2, %s886_s21 }
   0xf   : > { %v1085_v11 = vand.u32 4294901760, %v192_v10  ;;  %v180_v16 = vld [vmem:[%s166_s24 + $0x8] sm:$0xff]  ;;  %v179_v17 = vld [vmem:[%s166_s24] sm:$0xff] }
  0x10   : > { %v262_v12 = vsub.f32 %v183_v3, %v1079_v7  ;;  %v1090_v13 = vsub.f32 %v186_v4, %v1081_v8  ;;  %v1093_v14 = vsub.f32 %v189_v5, %v1083_v9  ;;  %938 = vmatprep.mubr.f32.mxu1 %v1079_v7  ;;  %v223_v21 = vand.u32 4294901760, %v180_v16 }
  0x11   : > { %v1102_v15 = vsub.f32 %v192_v10, %v1085_v11  ;;  %v226_v22 = vand.u32 4294901760, %v179_v17 }
  0x12   : > { %v263_v18 = vand.u32 4294901760, %v262_v12  ;;  %v273_v19 = vand.u32 4294901760, %v1090_v13  ;;  %v283_v20 = vand.u32 4294901760, %v1093_v14  ;;  %924 = vmatprep.subr.mxu0 %v223_v21  ;;  %v331_v27 = vsub.f32 %v180_v16, %v223_v21 }
  0x13   : > { %v293_v23 = vand.u32 4294901760, %v1102_v15  ;;  %v338_v29 = vsub.f32 %v179_v17, %v226_v22  ;;  %925 = vmatpush3.msra.mxu0 %v223_v21 }
  0x14   : > { %v264_v24 = vsub.f32 %v262_v12, %v263_v18  ;;  %v274_v25 = vsub.f32 %v1090_v13, %v273_v19  ;;  %v284_v26 = vsub.f32 %v1093_v14, %v283_v20  ;;  %926 = vmatprep.subr.mxu0 %v226_v22  ;;  %v332_v33 = vand.u32 4294901760, %v331_v27 }
  0x15   : > { %v294_v28 = vsub.f32 %v1102_v15, %v293_v23  ;;  %v339_v34 = vand.u32 4294901760, %v338_v29  ;;  %927 = vmatpush3.msra.mxu0 %v226_v22 }
  0x16   : > { %v265_v30 = vand.u32 4294901760, %v264_v24  ;;  %v275_v31 = vand.u32 4294901760, %v274_v25  ;;  %v285_v32 = vand.u32 4294901760, %v284_v26  ;;  %v333_v35 = vsub.f32 %v331_v27, %v332_v33  ;;  %944 = vmatprep.subr.mxu0 %v331_v27 }
  0x17   : > { %v295_v36 = vand.u32 4294901760, %v294_v28  ;;  %v340_v37 = vsub.f32 %v338_v29, %v339_v34 }
  0x18   : > { %928 = vmatprep.mubr.f32.mxu0 %v265_v30  ;;  %v334_v38 = vand.u32 4294901760, %v333_v35 }
  0x19   : > { %929 = vmatmul.mubr.f32.vlgmr.msra.gmra.mxu0 %v275_v31  ;;  %v341_v39 = vand.u32 4294901760, %v340_v37 }
  0x1a   : > { %931 = vmatprep.mubr.f32.mxu0 %v285_v32  ;;  %945 = vmatpush3.msra.mxu0 %v331_v27 }
  0x1b   : > { %946 = vmatprep.subr.mxu0 %v338_v29  ;;  %934 = vmatprep.subr.mxu1 %v334_v38 }
  0x1c   : > { %947 = vmatpush3.msra.mxu0 %v338_v29  ;;  %935 = vmatpush3.msra.mxu1 %v334_v38 }
  0x1d   : > { %932 = vmatmul.mubr.f32.gmra.mxu0 %v295_v36  ;;  %936 = vmatprep.subr.mxu1 %v341_v39 }
  0x1e   : > { %948 = vmatprep.mubr.f32.mxu0 %v262_v12  ;;  %964 = vmatprep.subr.mxu0 %v332_v33 }
  0x1f   : > { %937 = vmatpush3.msra.mxu1 %v341_v39 }
  0x20   : > { %939 = vmatmul.mubr.f32.vlgmr.msra.gmra.mxu1 %v1081_v8  ;;  %954 = vmatprep.subr.mxu1 %v223_v21 }
  0x21   : > { %955 = vmatpush3.msra.mxu1 %v223_v21  ;;  %949 = vmatmul.mubr.f32.vlgmr.msra.gmra.mxu0 %v1090_v13 }
  0x22   : > { %941 = vmatprep.mubr.f32.mxu1 %v1083_v9  ;;  %956 = vmatprep.subr.mxu1 %v226_v22 }
  0x23   : > { %951 = vmatprep.mubr.f32.mxu0 %v1093_v14  ;;  %957 = vmatpush3.msra.mxu1 %v226_v22 }
  0x24   : > { %942 = vmatmul.mubr.f32.gmra.mxu1 %v1085_v11  ;;  %965 = vmatpush3.msra.mxu0 %v332_v33 }
  0x25   : > { %952 = vmatmul.mubr.f32.gmra.mxu0 %v1102_v15  ;;  %958 = vmatprep.mubr.f32.mxu1 %v263_v18 }
  0x26   : > { %966 = vmatprep.subr.mxu0 %v339_v34  ;;  %974 = vmatprep.subr.mxu1 %v223_v21 }
  0x27   : > { %967 = vmatpush3.msra.mxu0 %v339_v34  ;;  %968 = vmatprep.mubr.f32.mxu0 %v1079_v7 }
  0x28   : > { %959 = vmatmul.mubr.f32.vlgmr.msra.gmra.mxu1 %v273_v19 }
  0x29   : > { %975 = vmatpush3.msra.mxu1 %v223_v21  ;;  %969 = vmatmul.mubr.f32.vlgmr.msra.gmra.mxu0 %v1081_v8 }
  0x2a   : > { %961 = vmatprep.mubr.f32.mxu1 %v283_v20  ;;  %976 = vmatprep.subr.mxu1 %v226_v22 }
  0x2b   : > { %971 = vmatprep.mubr.f32.mxu0 %v1083_v9  ;;  %977 = vmatpush3.msra.mxu1 %v226_v22 }
  0x2c   : > { %962 = vmatmul.mubr.f32.gmra.mxu1 %v293_v23 }
  0x2d   : > { %972 = vmatmul.mubr.f32.gmra.mxu0 %v1085_v11  ;;  %978 = vmatprep.mubr.f32.mxu1 %v1079_v7 }
  0x30   : > { %979 = vmatmul.mubr.f32.vlgmr.msra.gmra.mxu1 %v1081_v8 }
  0x31   : > { %981 = vmatprep.mubr.f32.mxu1 %v1083_v9 }
  0x34   : > { %982 = vmatmul.mubr.f32.gmra.mxu1 %v1085_v11 }
  0xd9   : > { %v930_v40 = vpop.f32.mrf.mxu0 }
  0xdb   : > { %v267_v41 = vpop.f32.mrf.mxu0 }
  0xdd   : > { %v933_v42 = vpop.f32.mrf.mxu0 }
  0xdf   : > { %v287_v43 = vpop.f32.mrf.mxu0 }
  0xe0   : > { %v940_v44 = vpop.f32.mrf.mxu1 }
  0xe1   : > { %v950_v45 = vpop.f32.mrf.mxu0  ;;  %v385_v51 = vadd.f32 %v940_v44, %v930_v40 }
  0xe2   : > { %v378_v46 = vpop.f32.mrf.mxu1 }
  0xe3   : > { %v472_v47 = vpop.f32.mrf.mxu0  ;;  %v379_v54 = vadd.f32 %v378_v46, %v267_v41  ;;  %v480_v58 = vadd.f32 %v950_v45, %v385_v51 }
  0xe4   : > { %v943_v48 = vpop.f32.mrf.mxu1 }
  0xe5   : > { %v953_v49 = vpop.f32.mrf.mxu0  ;;  %v397_v55 = vadd.f32 %v943_v48, %v933_v42  ;;  %v473_v62 = vadd.f32 %v472_v47, %v379_v54 }
  0xe6   : > { %v390_v50 = vpop.f32.mrf.mxu1 }
  0xe7   : > { %v486_v52 = vpop.f32.mrf.mxu0  ;;  %v391_v59 = vadd.f32 %v390_v50, %v287_v43  ;;  %v494_v63 = vadd.f32 %v953_v49, %v397_v55 }
  0xe8   : > { %v960_v53 = vpop.f32.mrf.mxu1 }
  0xe9   : > { %v970_v56 = vpop.f32.mrf.mxu0  ;;  %v577_v0 = vadd.f32 %v960_v53, %v480_v58  ;;  %v487_v3 = vadd.f32 %v486_v52, %v391_v59 }
  0xea   : > { %v568_v57 = vpop.f32.mrf.mxu1 }
  0xeb   : > { %v669_v60 = vpop.f32.mrf.mxu0  ;;  %v569_v4 = vadd.f32 %v568_v57, %v473_v62  ;;  %v676_v7 = vadd.f32 %v970_v56, %v577_v0 }
  0xec   : > { %v963_v61 = vpop.f32.mrf.mxu1 }
  0xed   : > { %v973_v2 = vpop.f32.mrf.mxu0  ;;  %v593_v5 = vadd.f32 %v963_v61, %v494_v63  ;;  %v670_v11 = vadd.f32 %v669_v60, %v569_v4 }
  0xee   : > { %v584_v1 = vpop.f32.mrf.mxu1 }
  0xef   : > { %v585_v8 = vadd.f32 %v584_v1, %v487_v3  ;;  %v681_v9 = vpop.f32.mrf.mxu0  ;;  %v688_v12 = vadd.f32 %v973_v2, %v593_v5 }
  0xf0   : > { %v980_v6 = vpop.f32.mrf.mxu1 }
  0xf1   : > { %v767_v13 = vadd.f32 %v980_v6, %v676_v7  ;;  %v682_v15 = vadd.f32 %v681_v9, %v585_v8 }
  0xf2   : > { %v760_v10 = vpop.f32.mrf.mxu1 }
  0xf3   : > { %v761_v16 = vadd.f32 %v760_v10, %v670_v11  ;;  %v783_v19 = vmul.f32 %v767_v13, %v767_v13 }
  0xf4   : > { %v983_v14 = vpop.f32.mrf.mxu1 }
  0xf5   : > { %v779_v17 = vadd.f32 %v983_v14, %v688_v12  ;;  %v782_v22 = vmul.f32 %v761_v16, %v761_v16 }
  0xf6   : > { %v772_v18 = vpop.f32.mrf.mxu1 }
  0xf7   : > { %v785_v20 = vmul.f32 %v779_v17, %v779_v17  ;;  %v773_v21 = vadd.f32 %v772_v18, %v682_v15 }
  0xf9   : > { %v787_v23 = vadd.f32 %v785_v20, %v783_v19  ;;  %v784_v24 = vmul.f32 %v773_v21, %v773_v21 }
  0xfb   : > { %791 = vst.msk [vmem:[%s174_s27 + $0x8] sm:$0x1] %vm790_vm1, %v787_v23  ;;  %v786_v25 = vadd.f32 %v784_v24, %v782_v22 }
  0xfd   : > { %789 = vst.msk [vmem:[%s174_s27] sm:$0xff] %vm788_vm2, %v786_v25 }
  0xfe PF: > { %s12_s11 = sadd.s32 1, %s1030_s11   ;;  %s1141_s9 = smov %s1026_s10 }
  0xff   : > { %p9_p5 = scmp.ge.s32.totalorder %s12_s11, 4   ;;  %s1142_s10 = smov %s1144_s12 }
 0x101   :  { %11 = sbr.rel (!%p9_p5) target bundleno = 2 (0x2), region = 58 }

</bundles_post_ra>
